<compile_context>
chip_gen: v7x
topology: tpu7x:2x2x1
jax: 0.10.0
libtpu: 0.0.40
codegen_flags: <defaults>
</compile_context>

<pallas_src>
import functools

import jax
import jax.numpy as jnp
from jax.experimental import pallas as pl
from jax.experimental.pallas import tpu as pltpu

STATE_SIZE = 6       # Acrobot-v1 observation dim
N_HIDDEN = 32
ACTION_SIZE = 3

LANE = 128           # TPU lane width; slabs padded to this on the last dim
S_PAD = 8            # state feature dim padded 6 -> 8 (sublane multiple)
OUT_ROWS = 8         # sublane-padded action dim of the transposed output slab

# Weight slab layout (W3 overlapped into W2's zero rows to shrink the slab):
ROW_W1 = 0           # rows [  0,   8): W1 real at [0:6,   0:32)
ROW_W2 = 8           # rows [  8, 136) read by layer 2; W2 real at [8:40, 0:32)
ROW_W3 = 40          # rows [ 40, 168) read by layer 3; W3 real at [40:72, 0:3)
W_SLAB_ROWS = 168
MASK_VAL = -1e30     # baked into bias slab row 2, lanes >= ACTION_SIZE


def _round_up(x, m):
    return (x + m - 1) // m * m


def policy_kernel(s_ref, w_ref, b_ref, o_ref):
    # s_ref: [TB, 8]   w_ref: [168, 128]   b_ref: [8, 128]   o_ref: [8, TB]
    # All padding rows/lanes in the slabs are zero (except the -1e30 action
    # mask in b_ref row 2), so the padded 128-wide matmuls reproduce the
    # original 6/32/3 math exactly.
    # layer 1: [TB, 8] @ [8, 128] + b1, relu
    x = jnp.dot(s_ref[...], w_ref[ROW_W1:ROW_W1 + S_PAD, :],
                preferred_element_type=jnp.float32)
    x = jnp.maximum(x + b_ref[0:1, :], 0.0)
    # layer 2: [TB, 128] @ [128, 128] + b2, relu
    #   (x lanes >= 32 are zero, so the W3 rows overlapped at slab rows
    #    [40, 72) contribute nothing here)
    x = jnp.dot(x, w_ref[ROW_W2:ROW_W2 + LANE, :],
                preferred_element_type=jnp.float32)
    x = jnp.maximum(x + b_ref[1:2, :], 0.0)
    # layer 3: [TB, 128] @ [128, 128] + b3 (only first ACTION_SIZE lanes real;
    #   lanes >= ACTION_SIZE receive the -1e30 mask from the bias row)
    logits = jnp.dot(x, w_ref[ROW_W3:ROW_W3 + LANE, :],
                     preferred_element_type=jnp.float32)
    logits = logits + b_ref[2:3, :]
    # Transpose on the XLU, then run the softmax on the [8, TB] slab (actions
    # on sublanes, batch on lanes): ~16x less exp/VALU work than softmaxing the
    # full [TB, 128] tile, and the final store is lane-dense and unmasked.
    lt = logits.T[:OUT_ROWS, :]                        # [8, TB]
    m = jnp.max(lt, axis=0, keepdims=True)             # [1, TB]
    e = jnp.exp(lt - m)                                # masked rows -> exp(-1e30 - m) == 0
    denom = jnp.sum(e, axis=0, keepdims=True)          # [1, TB]
    inv = pl.reciprocal(denom, approx=False)           # exact: rows sum to 1
    o_ref[...] = (e * inv).astype(o_ref.dtype)


def pack_params(w1, b1, w2, b2, w3, b3):
    """Pack the 6 parameter tensors into two lane-dense VMEM slabs.

    Pack once, reuse across env steps.  W3 is overlapped into W2's zero rows
    (slab rows [40, 72)); the action-lane softmax mask is baked into bias row 2.
    """
    w_slab = jnp.zeros((W_SLAB_ROWS, LANE), jnp.float32)
    w_slab = w_slab.at[ROW_W1:ROW_W1 + STATE_SIZE, :N_HIDDEN].set(
        w1.astype(jnp.float32))
    w_slab = w_slab.at[ROW_W2:ROW_W2 + N_HIDDEN, :N_HIDDEN].set(
        w2.astype(jnp.float32))
    w_slab = w_slab.at[ROW_W3:ROW_W3 + N_HIDDEN, :ACTION_SIZE].set(
        w3.astype(jnp.float32))
    b_slab = jnp.zeros((8, LANE), jnp.float32)
    b_slab = b_slab.at[0, :N_HIDDEN].set(b1.reshape(-1).astype(jnp.float32))
    b_slab = b_slab.at[1, :N_HIDDEN].set(b2.reshape(-1).astype(jnp.float32))
    b_slab = b_slab.at[2, :].set(jnp.full((LANE,), MASK_VAL, jnp.float32))
    b_slab = b_slab.at[2, :ACTION_SIZE].set(b3.reshape(-1).astype(jnp.float32))
    return w_slab, b_slab


@functools.partial(jax.jit, static_argnames=("block_b",))
def policy_forward(state, w_slab, b_slab, *, block_b=1024):
    """state: [B, STATE_SIZE] f32 -> softmax probs [B, ACTION_SIZE] f32."""
    B = state.shape[0]
    block_b = max(LANE, _round_up(block_b, LANE))
    b128 = _round_up(B, LANE)              # batch padded to a lane multiple
    if b128 // LANE <= 1:
        tb = LANE                          # single tile
    else:
        # keep >= 2 grid steps so ("parallel",) shards across both v7x TCs
        tb = min(block_b, _round_up(-(-b128 // 2), LANE))
    b_pad = _round_up(b128, tb)
    grid = (b_pad // tb,)

    # pad state to [b_pad, 8] (zero rows/cols are inert through the MLP)
    s_pad = jnp.zeros((b_pad, S_PAD), jnp.float32)
    s_pad = s_pad.at[:B, :STATE_SIZE].set(state.astype(jnp.float32))

    flops = 2 * b_pad * (S_PAD * LANE + LANE * LANE + LANE * LANE)
    bytes_accessed = 4 * (b_pad * S_PAD + w_slab.size + b_slab.size
                          + OUT_ROWS * b_pad)

    out = pl.pallas_call(
        policy_kernel,
        out_shape=jax.ShapeDtypeStruct((OUT_ROWS, b_pad), jnp.float32),
        grid_spec=pltpu.PrefetchScalarGridSpec(
            num_scalar_prefetch=0,
            grid=grid,
            in_specs=[
                pl.BlockSpec((tb, S_PAD), lambda i: (i, 0)),              # state tile
                pl.BlockSpec((W_SLAB_ROWS, LANE), lambda i: (0, 0)),      # weights (resident)
                pl.BlockSpec((8, LANE), lambda i: (0, 0)),                # biases  (resident)
            ],
            out_specs=pl.BlockSpec((OUT_ROWS, tb), lambda i: (0, i)),     # transposed probs
        ),
        compiler_params=pltpu.CompilerParams(
            dimension_semantics=("parallel",)),                           # v7x dual-TC
        cost_estimate=pl.CostEstimate(
            flops=flops,
            transcendentals=b_pad * OUT_ROWS,
            bytes_accessed=bytes_accessed),
    )(s_pad, w_slab, b_slab)
    return out[:ACTION_SIZE, :B].T


def xavier_uniform(key, shape, dtype=jnp.float32):
    fan_in, fan_out = shape
    bound = jnp.sqrt(6.0 / (fan_in + fan_out))
    return jax.random.uniform(key, shape, dtype, minval=-bound, maxval=bound)


def init_params(key, zero_bias=True):
    k1, k2, k3, k4, k5, k6 = jax.random.split(key, 6)
    w1 = xavier_uniform(k1, (STATE_SIZE, N_HIDDEN))
    w2 = xavier_uniform(k2, (N_HIDDEN, N_HIDDEN))
    w3 = xavier_uniform(k3, (N_HIDDEN, ACTION_SIZE))
    if zero_bias:   # matches the PyTorch module's params_init
        b1 = jnp.zeros((N_HIDDEN,), jnp.float32)
        b2 = jnp.zeros((N_HIDDEN,), jnp.float32)
        b3 = jnp.zeros((ACTION_SIZE,), jnp.float32)
    else:           # non-zero biases to exercise the bias-slab packing in tests
        b1 = 0.1 * jax.random.normal(k4, (N_HIDDEN,), jnp.float32)
        b2 = 0.1 * jax.random.normal(k5, (N_HIDDEN,), jnp.float32)
        b3 = 0.1 * jax.random.normal(k6, (ACTION_SIZE,), jnp.float32)
    return w1, b1, w2, b2, w3, b3


if __name__ == "__main__":
    key = jax.random.PRNGKey(0)
    k_params, k_state = jax.random.split(key)
    w1, b1, w2, b2, w3, b3 = init_params(k_params, zero_bias=False)

    # pack once, reuse across calls (RL env steps)
    w_slab, b_slab = pack_params(w1, b1, w2, b2, w3, b3)

    # pure-JAX reference for correctness (forced to highest f32 precision)
    def ref_forward(s):
        hp = jax.lax.Precision.HIGHEST
        x = jnp.maximum(jnp.dot(s, w1, precision=hp) + b1, 0.0)
        x = jnp.maximum(jnp.dot(x, w2, precision=hp) + b2, 0.0)
        return jax.nn.softmax(jnp.dot(x, w3, precision=hp) + b3, axis=1)

    # batch=2 covers the tiny single-tile (per-env-step) path; batch=384 covers
    # the padded multi-step grid path (2 grid steps, dual-TC shardable).
    for batch in (2, 384):
        state = jax.random.normal(jax.random.fold_in(k_state, batch),
                                  (batch, STATE_SIZE), jnp.float32)
        probs = policy_forward(state, w_slab, b_slab)
        jax.block_until_ready(probs)
        ref = ref_forward(state)

        assert probs.shape == (batch, ACTION_SIZE)
        # exact normalization (no approx reciprocal): rows sum to 1 at f32 eps
        assert bool(jnp.all(jnp.abs(jnp.sum(probs, axis=1) - 1.0) < 1e-5))
        # tolerance covers MXU-vs-XLA f32 matmul precision differences
        assert bool(jnp.max(jnp.abs(probs - ref)) < 5e-3)

    print("KERNEL_OK")
</pallas_src>

<mosaic_0001>
module attributes {stable_mosaic.version = 11 : i64} {
  func.func @policy_kernel(%arg0: i32, %arg1: memref<128x8xf32, #tpu.memory_space<vmem>>, %arg2: memref<168x128xf32, #tpu.memory_space<vmem>>, %arg3: memref<8x128xf32, #tpu.memory_space<vmem>>, %arg4: memref<8x128xf32, #tpu.memory_space<vmem>>) attributes {dimension_semantics = [#tpu.dimension_semantics<parallel>], iteration_bounds = array<i64: 1>, scalar_prefetch = 0 : i64, scratch_operands = 0 : i64, tpu.core_type = #tpu.core_type<tc>, window_params = [{transform_indices = @transform_0, window_bounds = array<i64: 128, 8>}, {pipeline_mode = #tpu.pipeline_mode<synchronous>, transform_indices = @transform_1, window_bounds = array<i64: 168, 128>}, {pipeline_mode = #tpu.pipeline_mode<synchronous>, transform_indices = @transform_2, window_bounds = array<i64: 8, 128>}, {transform_indices = @transform_3, window_bounds = array<i64: 8, 128>}]} {
    %c0 = arith.constant 0 : index
    %c0_0 = arith.constant 0 : index
    %0 = vector.load %arg1[%c0, %c0_0] : memref<128x8xf32, #tpu.memory_space<vmem>>, vector<128x8xf32>
    %c0_1 = arith.constant 0 : index
    %c0_2 = arith.constant 0 : index
    %1 = vector.load %arg2[%c0_1, %c0_2] : memref<168x128xf32, #tpu.memory_space<vmem>>, vector<8x128xf32>
    %cst = arith.constant dense<0.000000e+00> : vector<128x128xf32>
    %2 = tpu.matmul %0, %1, %cst {dimension_numbers = #tpu.dot_dimension_numbers<[1], [0], [0], [1], [0, 0, 1, 1], [], []>} : vector<128x8xf32>, vector<8x128xf32>, vector<128x128xf32> -> vector<128x128xf32>
    %c0_3 = arith.constant 0 : index
    %c0_4 = arith.constant 0 : index
    %3 = vector.load %arg3[%c0_3, %c0_4] : memref<8x128xf32, #tpu.memory_space<vmem>>, vector<1x128xf32>
    %4 = vector.broadcast %3 : vector<1x128xf32> to vector<128x128xf32>
    %5 = arith.addf %2, %4 : vector<128x128xf32>
    %cst_5 = arith.constant 0.000000e+00 : f32
    %6 = vector.broadcast %cst_5 : f32 to vector<128x128xf32>
    %7 = arith.maximumf %5, %6 : vector<128x128xf32>
    %c8 = arith.constant 8 : index
    %c0_6 = arith.constant 0 : index
    %8 = vector.load %arg2[%c8, %c0_6] : memref<168x128xf32, #tpu.memory_space<vmem>>, vector<128x128xf32>
    %cst_7 = arith.constant dense<0.000000e+00> : vector<128x128xf32>
    %9 = tpu.matmul %7, %8, %cst_7 {dimension_numbers = #tpu.dot_dimension_numbers<[1], [0], [0], [1], [0, 0, 1, 1], [], []>} : vector<128x128xf32>, vector<128x128xf32>, vector<128x128xf32> -> vector<128x128xf32>
    %c1 = arith.constant 1 : index
    %c0_8 = arith.constant 0 : index
    %10 = vector.load %arg3[%c1, %c0_8] : memref<8x128xf32, #tpu.memory_space<vmem>>, vector<1x128xf32>
    %11 = vector.broadcast %10 : vector<1x128xf32> to vector<128x128xf32>
    %12 = arith.addf %9, %11 : vector<128x128xf32>
    %cst_9 = arith.constant 0.000000e+00 : f32
    %13 = vector.broadcast %cst_9 : f32 to vector<128x128xf32>
    %14 = arith.maximumf %12, %13 : vector<128x128xf32>
    %c40 = arith.constant 40 : index
    %c0_10 = arith.constant 0 : index
    %15 = vector.load %arg2[%c40, %c0_10] : memref<168x128xf32, #tpu.memory_space<vmem>>, vector<128x128xf32>
    %cst_11 = arith.constant dense<0.000000e+00> : vector<128x128xf32>
    %16 = tpu.matmul %14, %15, %cst_11 {dimension_numbers = #tpu.dot_dimension_numbers<[1], [0], [0], [1], [0, 0, 1, 1], [], []>} : vector<128x128xf32>, vector<128x128xf32>, vector<128x128xf32> -> vector<128x128xf32>
    %c2 = arith.constant 2 : index
    %c0_12 = arith.constant 0 : index
    %17 = vector.load %arg3[%c2, %c0_12] : memref<8x128xf32, #tpu.memory_space<vmem>>, vector<1x128xf32>
    %18 = vector.broadcast %17 : vector<1x128xf32> to vector<128x128xf32>
    %19 = arith.addf %16, %18 : vector<128x128xf32>
    %20 = tpu.transpose %19, [1, 0] : vector<128x128xf32> -> vector<128x128xf32>
    %21 = vector.extract_strided_slice %20 {offsets = [0, 0], sizes = [8, 128], strides = [1, 1]} : vector<128x128xf32> to vector<8x128xf32>
    %cst_13 = arith.constant dense<0xFF800000> : vector<128xf32>
    %22 = vector.multi_reduction <maximumf>, %21, %cst_13 [0] : vector<8x128xf32> to vector<128xf32>
    %23 = vector.shape_cast %22 : vector<128xf32> to vector<1x128xf32>
    %24 = vector.broadcast %23 : vector<1x128xf32> to vector<8x128xf32>
    %25 = arith.subf %21, %24 : vector<8x128xf32>
    %26 = math.exp %25 : vector<8x128xf32>
    %cst_14 = arith.constant dense<0.000000e+00> : vector<128xf32>
    %27 = vector.multi_reduction <add>, %26, %cst_14 [0] : vector<8x128xf32> to vector<128xf32>
    %28 = vector.shape_cast %27 : vector<128xf32> to vector<1x128xf32>
    %29 = tpu.reciprocal %28 : vector<1x128xf32> -> vector<1x128xf32>
    %30 = vector.broadcast %29 : vector<1x128xf32> to vector<8x128xf32>
    %31 = arith.mulf %26, %30 : vector<8x128xf32>
    %c0_15 = arith.constant 0 : index
    %c0_16 = arith.constant 0 : index
    %32 = vector.load %arg4[%c0_15, %c0_16] : memref<8x128xf32, #tpu.memory_space<vmem>>, vector<8x128xf32>
    tpu.vector_store %arg4[%c0_15, %c0_16], %31 {strides = array<i32>} : memref<8x128xf32, #tpu.memory_space<vmem>>, vector<8x128xf32>,
    return
  }
  func.func @transform_0(%arg0: i32) -> (i32, i32) {
    %c0_i32 = arith.constant 0 : i32
    %c0_i32_0 = arith.constant 0 : i32
    return %arg0, %c0_i32 : i32, i32
  }
  func.func @transform_1(%arg0: i32) -> (i32, i32) {
    %c0_i32 = arith.constant 0 : i32
    %c0_i32_0 = arith.constant 0 : i32
    %c0_i32_1 = arith.constant 0 : i32
    return %c0_i32, %c0_i32_0 : i32, i32
  }
  func.func @transform_2(%arg0: i32) -> (i32, i32) {
    %c0_i32 = arith.constant 0 : i32
    %c0_i32_0 = arith.constant 0 : i32
    %c0_i32_1 = arith.constant 0 : i32
    return %c0_i32, %c0_i32_0 : i32, i32
  }
  func.func @transform_3(%arg0: i32) -> (i32, i32) {
    %c0_i32 = arith.constant 0 : i32
    %c0_i32_0 = arith.constant 0 : i32
    return %c0_i32, %arg0 : i32, i32
  }
}

</mosaic_0001>

<bundles_post_ra>
// kernel: policy_forward.1
= control target key start
LH: loop header
LB: loop body
LE: loop exit
PB: predicated region body
PF: predicated region fallthrough
CT: control target
= control target key end

     0   :  { %8 = vsyncpa [#allocation3], 0  ;;  %s996_s12 = smov [#allocation2]   ;;  %s1107_s0 = inlined_call_operand.vmem [shape: f32[128,8], index: 0, kind: input, shape index: {}]   ;;  %s1108_s1 = inlined_call_operand.hbm [shape: f32[168,128], index: 1, kind: input, shape index: {}]   ;;  %s1109_s2 = inlined_call_operand.vmem [shape: f32[8,128], index: 2, kind: input, shape index: {}]   ;;  %s1110_s3 = inlined_call_operand.vmem [shape: f32[8,128], index: 3, kind: output, shape index: {}]  }
   0x1   :  { %s16_s13 = sshll.u32 %s996_s12, 4  ;;  %s972_s16 = scalar_lea.hbm %s1108_s1, 2688  ;;  %s17_s13 = int_to_ptr.vmem [resolvable:$true] %s16_s13 }
   0x2   :  { %p973_p0 = scmp.ne.s32.totalorder %s1108_s1, %s972_s16  ;;  %p976_p1 = scmp.lt.u32.totalorder %s972_s16, %s1108_s1 }
   0x4   :  { %p978_p2 = pnand %p976_p1, %p973_p0 }
   0x6   :  { %981 = shalt.err (!%p978_p2)
}
   0x7   :  { %s982_s21 = scalar_lea.vmem %s17_s13, 2688  ;;  %p987_p4 = scmp.lt.s32.totalorder %s17_s13, %s17_s13 }
   0x8   :  { %p983_p3 = scmp.ne.s32.totalorder %s17_s13, %s982_s21  ;;  %p988_p5 = scmp.lt.s32.totalorder %s982_s21, %s982_s21 }
   0xa   :  { %p989_p6 = por %p988_p5, %p987_p4 }
   0xc   :  { %p990_p7 = pnand %p989_p6, %p983_p3 }
   0xe   :  { %993 = shalt.err (!%p990_p7)
}
   0xf   :  { %s997_s22 = smov 128   ;;  %s998_s23 = smov 8  }
  0x10   :  { %22 = dma.hbm_to_vmem [thread:$0]  %s1108_s1, 2688, %s17_s13, [#allocation3], %s997_s22, %s997_s22, %s998_s23  }
  0x11   :  { %994 = dma.done.wait [#allocation3], 2688  }
  0x12   :  { %995 = vsyncadd [#allocation3], 4294964608  ;;  %vm50_vm0 = vcmask 64512   ;;  %v44_v0 = vld [vmem:[#allocation2] sm:$0xff]  ;;  %v29_v2 = vld [vmem:[%s1107_s0 + $0x8] sm:$0xff] }
  0x13   :  { %v28_v1 = vld [vmem:[%s1107_s0] sm:$0xff]  ;;  %763 = vmatprep.subr.mxu0 %v44_v0  ;;  %v30_v3 = vld [vmem:[%s1107_s0 + $0x10] sm:$0xff]  ;;  %v31_v4 = vld [vmem:[%s1107_s0 + $0x18] sm:$0xff] }
  0x14   :  { %765 = vmatprep.mubr.msk.f32.mxu0 %vm50_vm0, %v28_v1  ;;  %764 = vmatpush3.msra.mxu0 %v44_v0  ;;  %v32_v5 = vld [vmem:[%s1107_s0 + $0x20] sm:$0xff]  ;;  %v260_v6 = vld [vmem:[#allocation2 + $0x8] sm:$0xff]  ;;  %v261_v7 = vld [vmem:[#allocation2 + $0x10] sm:$0xff] }
  0x15   :  { %766 = vmatmul.mubr.msk.f32.vlgmr.msra.gmra.mrb[0].mxu0 %vm50_vm0, %v29_v2  ;;  %v262_v8 = vld [vmem:[#allocation2 + $0x18] sm:$0xff]  ;;  %v263_v9 = vld [vmem:[#allocation2 + $0x20] sm:$0xff]  ;;  %v901_v10 = vpack.c.bf16 %v261_v7, %v260_v6  ;;  %v264_v12 = vld [vmem:[#allocation2 + $0x28] sm:$0xff] }
  0x16   :  { %768 = vmatprep.mubr.msk.f32.mxu0 %vm50_vm0, %v30_v3  ;;  %v905_v11 = vpack.c.bf16 %v263_v9, %v262_v8  ;;  %v265_v13 = vld [vmem:[#allocation2 + $0x30] sm:$0xff]  ;;  %v33_v14 = vld [vmem:[%s1107_s0 + $0x28] sm:$0xff]  ;;  %v266_v16 = vld [vmem:[#allocation2 + $0x38] sm:$0xff] }
  0x17   :  { %v909_v15 = vpack.c.bf16 %v265_v13, %v264_v12  ;;  %v267_v17 = vld [vmem:[#allocation2 + $0x40] sm:$0xff]  ;;  %v34_v18 = vld [vmem:[%s1107_s0 + $0x30] sm:$0xff]  ;;  %902 = vmatprep.subr.bf16.mxu1 %v901_v10  ;;  %v35_v20 = vld [vmem:[%s1107_s0 + $0x38] sm:$0xff] }
  0x18   :  { %904 = vmatpush3.bf16.msra.mxu1 %v901_v10  ;;  %v913_v19 = vpack.c.bf16 %v267_v17, %v266_v16  ;;  %v268_v21 = vld [vmem:[#allocation2 + $0x48] sm:$0xff]  ;;  %v269_v22 = vld [vmem:[#allocation2 + $0x50] sm:$0xff]  ;;  %v36_v23 = vld [vmem:[%s1107_s0 + $0x40] sm:$0xff] }
  0x19   :  { %769 = vmatmul.mubr.msk.f32.gmra.mrb[2].mxu0 %vm50_vm0, %v31_v4  ;;  %934 = vmatprep.subr.bf16.mxu0 %v909_v15  ;;  %v917_v24 = vpack.c.bf16 %v269_v22, %v268_v21  ;;  %v37_v25 = vld [vmem:[%s1107_s0 + $0x48] sm:$0xff]  ;;  %v270_v26 = vld [vmem:[#allocation2 + $0x58] sm:$0xff]  ;;  %v271_v27 = vld [vmem:[#allocation2 + $0x60] sm:$0xff] }
  0x1a   :  { %771 = vmatprep.mubr.msk.f32.mxu0 %vm50_vm0, %v32_v5  ;;  %906 = vmatprep.subr.bf16.mxu1 %v905_v11  ;;  %v38_v28 = vld [vmem:[%s1107_s0 + $0x50] sm:$0xff]  ;;  %v921_v29 = vpack.c.bf16 %v271_v27, %v270_v26  ;;  %v39_v30 = vld [vmem:[%s1107_s0 + $0x58] sm:$0xff]  ;;  %v272_v31 = vld [vmem:[#allocation2 + $0x68] sm:$0xff] }
  0x1b   :  { %936 = vmatpush3.bf16.msra.mxu0 %v909_v15  ;;  %v273_v32 = vld [vmem:[#allocation2 + $0x70] sm:$0xff]  ;;  %v40_v33 = vld [vmem:[%s1107_s0 + $0x60] sm:$0xff]  ;;  %v41_v35 = vld [vmem:[%s1107_s0 + $0x68] sm:$0xff] }
  0x1c   :  { %938 = vmatprep.subr.bf16.mxu0 %v913_v19  ;;  %908 = vmatpush3.bf16.msra.mxu1 %v905_v11  ;;  %v925_v34 = vpack.c.bf16 %v273_v32, %v272_v31  ;;  %v42_v36 = vld [vmem:[%s1107_s0 + $0x70] sm:$0xff]  ;;  %v43_v37 = vld [vmem:[%s1107_s0 + $0x78] sm:$0xff]  ;;  %v275_v39 = vld [vmem:[#allocation2 + $0x80] sm:$0xff] }
  0x1d   :  { %772 = vmatmul.mubr.msk.f32.gmra.mrb[4].mxu0 %vm50_vm0, %v33_v14  ;;  %910 = vmatprep.subr.bf16.mxu1 %v909_v15  ;;  %v274_v38 = vld [vmem:[#allocation2 + $0x78] sm:$0xff]  ;;  %v454_v41 = vld [vmem:[#allocation2 + $0x88] sm:$0xff]  ;;  %v455_v42 = vld [vmem:[#allocation2 + $0x90] sm:$0xff] }
  0x1e   :  { %774 = vmatprep.mubr.msk.f32.mxu0 %vm50_vm0, %v34_v18  ;;  %v929_v40 = vpack.c.bf16 %v275_v39, %v274_v38  ;;  %v957_v43 = vpack.c.bf16 %v455_v42, %v454_v41  ;;  %v663_v44 = vld [vmem:[%s1109_s2] ss:$0 sm:$0xff]  ;;  %v680_v32 = vld [vmem:[%s1109_s2 + $0x1] ss:$0 sm:$0xff] }
  0x1f   :  { %940 = vmatpush3.bf16.msra.mxu0 %v913_v19 }
  0x20   :  { %942 = vmatprep.subr.bf16.mxu0 %v917_v24  ;;  %912 = vmatpush3.bf16.msra.mxu1 %v909_v15 }
  0x21   :  { %775 = vmatmul.mubr.msk.f32.gmra.mrb[6].mxu0 %vm50_vm0, %v35_v20  ;;  %914 = vmatprep.subr.bf16.mxu1 %v913_v19 }
  0x22   :  { %777 = vmatprep.mubr.msk.f32.mxu0 %vm50_vm0, %v36_v23 }
  0x23   :  { %944 = vmatpush3.bf16.msra.mxu0 %v917_v24 }
  0x24   :  { %946 = vmatprep.subr.bf16.mxu0 %v921_v29  ;;  %916 = vmatpush3.bf16.msra.mxu1 %v913_v19 }
  0x25   :  { %778 = vmatmul.mubr.msk.f32.gmra.mrb[8].mxu0 %vm50_vm0, %v37_v25  ;;  %918 = vmatprep.subr.bf16.mxu1 %v917_v24 }
  0x26   :  { %780 = vmatprep.mubr.msk.f32.mxu0 %vm50_vm0, %v38_v28 }
  0x27   :  { %948 = vmatpush3.bf16.msra.mxu0 %v921_v29 }
  0x28   :  { %950 = vmatprep.subr.bf16.mxu0 %v925_v34  ;;  %920 = vmatpush3.bf16.msra.mxu1 %v917_v24 }
  0x29   :  { %781 = vmatmul.mubr.msk.f32.gmra.mrb[10].mxu0 %vm50_vm0, %v39_v30  ;;  %922 = vmatprep.subr.bf16.mxu1 %v921_v29  ;;  %v457_v30 = vld [vmem:[#allocation2 + $0xa0] sm:$0xff] }
  0x2a   :  { %783 = vmatprep.mubr.msk.f32.mxu0 %vm50_vm0, %v40_v33 }
  0x2b   :  { %952 = vmatpush3.bf16.msra.mxu0 %v925_v34 }
  0x2c   :  { %924 = vmatpush3.bf16.msra.mxu1 %v921_v29  ;;  %954 = vmatprep.subr.bf16.mxu0 %v929_v40  ;;  %v456_v29 = vld [vmem:[#allocation2 + $0x98] sm:$0xff] }
  0x2d   :  { %784 = vmatmul.mubr.msk.f32.gmra.mrb[12].mxu0 %vm50_vm0, %v41_v35  ;;  %926 = vmatprep.subr.bf16.mxu1 %v925_v34  ;;  %v961_v31 = vpack.c.bf16 %v457_v30, %v456_v29 }
  0x2e   :  { %786 = vmatprep.mubr.msk.f32.mxu0 %vm50_vm0, %v42_v36 }
  0x2f   :  { %956 = vmatpush3.bf16.msra.mxu0 %v929_v40 }
  0x30   :  { %928 = vmatpush3.bf16.msra.mxu1 %v925_v34  ;;  %958 = vmatprep.subr.bf16.mxu0 %v957_v43 }
  0x31   :  { %787 = vmatmul.mubr.msk.f32.gmra.mrb[14].mxu0 %vm50_vm0, %v43_v37  ;;  %930 = vmatprep.subr.bf16.mxu1 %v929_v40 }
  0x33   :  { %960 = vmatpush3.bf16.msra.mxu0 %v957_v43 }
  0x34   :  { %932 = vmatpush3.bf16.msra.mxu1 %v929_v40  ;;  %962 = vmatprep.subr.bf16.mxu0 %v961_v31 }
  0x37   :  { %964 = vmatpush3.bf16.msra.mxu0 %v961_v31 }
  0xe8   :  { %v767_v45 = vpop.f32.mrb[0].mxu0 }
  0xe9   :  { %v171_v46 = vadd.f32 %v767_v45, %v663_v44  ;;  %v165_v47 = vpop.f32.mrb[1].mxu0 }
  0xea   :  { %v166_v48 = vadd.f32 %v663_v44, %v165_v47 }
  0xeb   :  { %v245_v51 = vmax.f32 %v171_v46, 0.0 }
  0xec   :  { %v770_v49 = vpop.f32.mrb[2].mxu0  ;;  %v244_v50 = vmax.f32 %v166_v48, 0.0 }
  0xed   :  { %v181_v52 = vadd.f32 %v770_v49, %v663_v44  ;;  %v175_v53 = vpop.f32.mrb[3].mxu0 }
  0xee   :  { %v176_v54 = vadd.f32 %v663_v44, %v175_v53  ;;  %821 = vmatprep.mubr.f32.mxu1 %v244_v50 }
  0xef   :  { %v247_v55 = vmax.f32 %v181_v52, 0.0  ;;  %822 = vmatmul.mubr.f32.vlgmr.msra.gmra.mrb[0].mxu1 %v245_v51 }
  0xf0   :  { %v246_v56 = vmax.f32 %v176_v54, 0.0  ;;  %v773_v57 = vpop.f32.mrb[4].mxu0 }
  0xf1   :  { %v191_v58 = vadd.f32 %v773_v57, %v663_v44  ;;  %v185_v59 = vpop.f32.mrb[5].mxu0 }
  0xf2   :  { %824 = vmatprep.mubr.f32.mxu1 %v246_v56  ;;  %v186_v60 = vadd.f32 %v663_v44, %v185_v59 }
  0xf3   :  { %v249_v61 = vmax.f32 %v191_v58, 0.0  ;;  %825 = vmatmul.mubr.f32.gmra.mrb[2].mxu1 %v247_v55 }
  0xf4   :  { %v248_v62 = vmax.f32 %v186_v60, 0.0  ;;  %v776_v63 = vpop.f32.mrb[6].mxu0 }
  0xf5   :  { %v201_v0 = vadd.f32 %v776_v63, %v663_v44  ;;  %v195_v1 = vpop.f32.mrb[7].mxu0 }
  0xf6   :  { %827 = vmatprep.mubr.f32.mxu1 %v248_v62  ;;  %v196_v2 = vadd.f32 %v663_v44, %v195_v1 }
  0xf7   :  { %828 = vmatmul.mubr.f32.gmra.mrb[4].mxu1 %v249_v61  ;;  %v251_v3 = vmax.f32 %v201_v0, 0.0 }
  0xf8   :  { %v250_v4 = vmax.f32 %v196_v2, 0.0  ;;  %v779_v5 = vpop.f32.mrb[8].mxu0 }
  0xf9   :  { %v211_v6 = vadd.f32 %v779_v5, %v663_v44  ;;  %v205_v7 = vpop.f32.mrb[9].mxu0 }
  0xfa   :  { %830 = vmatprep.mubr.f32.mxu1 %v250_v4  ;;  %v206_v8 = vadd.f32 %v663_v44, %v205_v7 }
  0xfb   :  { %831 = vmatmul.mubr.f32.gmra.mrb[6].mxu1 %v251_v3  ;;  %v253_v9 = vmax.f32 %v211_v6, 0.0 }
  0xfc   :  { %v252_v10 = vmax.f32 %v206_v8, 0.0  ;;  %v782_v11 = vpop.f32.mrb[10].mxu0 }
  0xfd   :  { %v221_v12 = vadd.f32 %v782_v11, %v663_v44  ;;  %v215_v13 = vpop.f32.mrb[11].mxu0 }
  0xfe   :  { %833 = vmatprep.mubr.f32.mxu1 %v252_v10  ;;  %v216_v14 = vadd.f32 %v663_v44, %v215_v13 }
  0xff   :  { %834 = vmatmul.mubr.f32.gmra.mrb[8].mxu1 %v253_v9  ;;  %v255_v15 = vmax.f32 %v221_v12, 0.0 }
 0x100   :  { %v254_v16 = vmax.f32 %v216_v14, 0.0  ;;  %v785_v17 = vpop.f32.mrb[12].mxu0 }
 0x101   :  { %v231_v18 = vadd.f32 %v785_v17, %v663_v44  ;;  %v225_v19 = vpop.f32.mrb[13].mxu0  ;;  %v681_v17 = vld [vmem:[%s1109_s2 + $0x2] ss:$0 sm:$0xff] }
 0x102   :  { %836 = vmatprep.mubr.f32.mxu1 %v254_v16  ;;  %v226_v20 = vadd.f32 %v663_v44, %v225_v19 }
 0x103   :  { %837 = vmatmul.mubr.f32.gmra.mrb[10].mxu1 %v255_v15  ;;  %v257_v21 = vmax.f32 %v231_v18, 0.0 }
 0x104   :  { %v256_v22 = vmax.f32 %v226_v20, 0.0  ;;  %v788_v23 = vpop.f32.mrb[14].mxu0 }
 0x105   :  { %v241_v24 = vadd.f32 %v788_v23, %v663_v44  ;;  %v235_v25 = vpop.f32.mrb[15].mxu0 }
 0x106   :  { %839 = vmatprep.mubr.f32.mxu1 %v256_v22  ;;  %v236_v26 = vadd.f32 %v663_v44, %v235_v25 }
 0x107   :  { %840 = vmatmul.mubr.f32.gmra.mrb[12].mxu1 %v257_v21  ;;  %v259_v27 = vmax.f32 %v241_v24, 0.0 }
 0x108   :  { %v258_v28 = vmax.f32 %v236_v26, 0.0 }
 0x10a   :  { %842 = vmatprep.mubr.f32.mxu1 %v258_v28 }
 0x10b   :  { %843 = vmatmul.mubr.f32.gmra.mrb[14].mxu1 %v259_v27 }
 0x1c2   :  { %v823_v33 = vpop.f32.mrb[0].mxu1 }
 0x1c3   :  { %v353_v34 = vadd.f32 %v823_v33, %v680_v32  ;;  %v347_v35 = vpop.f32.mrb[1].mxu1 }
 0x1c4   :  { %v348_v36 = vadd.f32 %v680_v32, %v347_v35 }
 0x1c5   :  { %v427_v39 = vmax.f32 %v353_v34, 0.0 }
 0x1c6   :  { %v426_v37 = vmax.f32 %v348_v36, 0.0  ;;  %v826_v38 = vpop.f32.mrb[2].mxu1 }
 0x1c7   :  { %v363_v40 = vadd.f32 %v826_v38, %v680_v32  ;;  %v357_v41 = vpop.f32.mrb[3].mxu1 }
 0x1c8   :  { %v358_v42 = vadd.f32 %v680_v32, %v357_v41  ;;  %877 = vmatprep.mubr.f32.mxu0 %v426_v37 }
 0x1c9   :  { %v429_v43 = vmax.f32 %v363_v40, 0.0  ;;  %878 = vmatmul.mubr.f32.vlgmr.msra.gmra.mrb[16].mxu0 %v427_v39 }
 0x1ca   :  { %v428_v44 = vmax.f32 %v358_v42, 0.0  ;;  %v829_v45 = vpop.f32.mrb[4].mxu1 }
 0x1cb   :  { %v373_v46 = vadd.f32 %v829_v45, %v680_v32  ;;  %v367_v47 = vpop.f32.mrb[5].mxu1 }
 0x1cc   :  { %880 = vmatprep.mubr.f32.mxu0 %v428_v44  ;;  %v368_v48 = vadd.f32 %v680_v32, %v367_v47 }
 0x1cd   :  { %v431_v49 = vmax.f32 %v373_v46, 0.0  ;;  %881 = vmatmul.mubr.f32.gmra.mrb[18].mxu0 %v429_v43 }
 0x1ce   :  { %v430_v50 = vmax.f32 %v368_v48, 0.0  ;;  %v832_v51 = vpop.f32.mrb[6].mxu1 }
 0x1cf   :  { %v383_v52 = vadd.f32 %v832_v51, %v680_v32  ;;  %v377_v53 = vpop.f32.mrb[7].mxu1 }
 0x1d0   :  { %883 = vmatprep.mubr.f32.mxu0 %v430_v50  ;;  %v378_v54 = vadd.f32 %v680_v32, %v377_v53 }
 0x1d1   :  { %884 = vmatmul.mubr.f32.gmra.mrb[20].mxu0 %v431_v49  ;;  %v433_v55 = vmax.f32 %v383_v52, 0.0 }
 0x1d2   :  { %v432_v56 = vmax.f32 %v378_v54, 0.0  ;;  %v835_v57 = vpop.f32.mrb[8].mxu1 }
 0x1d3   :  { %v393_v58 = vadd.f32 %v835_v57, %v680_v32  ;;  %v387_v59 = vpop.f32.mrb[9].mxu1 }
 0x1d4   :  { %886 = vmatprep.mubr.f32.mxu0 %v432_v56  ;;  %v388_v60 = vadd.f32 %v680_v32, %v387_v59 }
 0x1d5   :  { %887 = vmatmul.mubr.f32.gmra.mrb[22].mxu0 %v433_v55  ;;  %v435_v61 = vmax.f32 %v393_v58, 0.0 }
 0x1d6   :  { %v434_v62 = vmax.f32 %v388_v60, 0.0  ;;  %v838_v63 = vpop.f32.mrb[10].mxu1 }
 0x1d7   :  { %v403_v0 = vadd.f32 %v838_v63, %v680_v32  ;;  %v397_v1 = vpop.f32.mrb[11].mxu1 }
 0x1d8   :  { %889 = vmatprep.mubr.f32.mxu0 %v434_v62  ;;  %v398_v2 = vadd.f32 %v680_v32, %v397_v1 }
 0x1d9   :  { %890 = vmatmul.mubr.f32.gmra.mrb[24].mxu0 %v435_v61  ;;  %v437_v3 = vmax.f32 %v403_v0, 0.0 }
 0x1da   :  { %v436_v4 = vmax.f32 %v398_v2, 0.0  ;;  %v841_v5 = vpop.f32.mrb[12].mxu1 }
 0x1db   :  { %v413_v6 = vadd.f32 %v841_v5, %v680_v32  ;;  %v407_v7 = vpop.f32.mrb[13].mxu1 }
 0x1dc   :  { %892 = vmatprep.mubr.f32.mxu0 %v436_v4  ;;  %v408_v8 = vadd.f32 %v680_v32, %v407_v7 }
 0x1dd   :  { %893 = vmatmul.mubr.f32.gmra.mrb[26].mxu0 %v437_v3  ;;  %v439_v9 = vmax.f32 %v413_v6, 0.0 }
 0x1de   :  { %v438_v10 = vmax.f32 %v408_v8, 0.0  ;;  %v844_v11 = vpop.f32.mrb[14].mxu1 }
 0x1df   :  { %v423_v12 = vadd.f32 %v844_v11, %v680_v32  ;;  %v417_v13 = vpop.f32.mrb[15].mxu1 }
 0x1e0   :  { %895 = vmatprep.mubr.f32.mxu0 %v438_v10  ;;  %v418_v14 = vadd.f32 %v680_v32, %v417_v13 }
 0x1e1   :  { %896 = vmatmul.mubr.f32.gmra.mrb[28].mxu0 %v439_v9  ;;  %v441_v15 = vmax.f32 %v423_v12, 0.0 }
 0x1e2   :  { %v440_v16 = vmax.f32 %v418_v14, 0.0 }
 0x1e4   :  { %898 = vmatprep.mubr.f32.mxu0 %v440_v16 }
 0x1e5   :  { %899 = vmatmul.mubr.f32.gmra.mrb[30].mxu0 %v441_v15 }
 0x29c   :  { %v879_v18 = vpop.f32.mrb[16].mxu0 }
 0x29d   :  { %v529_v19 = vpop.f32.mrb[17].mxu0  ;;  %v535_v23 = vadd.f32 %v879_v18, %v681_v17 }
 0x29e   :  { %v530_v20 = vadd.f32 %v681_v17, %v529_v19 }
 0x2a0   :  { %v882_v21 = vpop.f32.mrb[18].mxu0  ;;  %608 = vxpose.xlu0.b32.start [1/16] (narrow) %v530_v20, 8 }
 0x2a1   :  { %v539_v22 = vpop.f32.mrb[19].mxu0  ;;  %v545_v29 = vadd.f32 %v882_v21, %v681_v17 }
 0x2a2   :  { %v540_v26 = vadd.f32 %v681_v17, %v539_v22 }
 0x2a4   :  { %609 = vxpose.xlu0.b32.cont [2/16] (narrow) %v535_v23, 8  ;;  %v885_v24 = vpop.f32.mrb[20].mxu0 }
 0x2a5   :  { %v549_v25 = vpop.f32.mrb[21].mxu0  ;;  %v555_v35 = vadd.f32 %v885_v24, %v681_v17 }
 0x2a6   :  { %v550_v32 = vadd.f32 %v681_v17, %v549_v25 }
 0x2a8   :  { %610 = vxpose.xlu0.b32.cont [3/16] (narrow) %v540_v26, 8  ;;  %v888_v27 = vpop.f32.mrb[22].mxu0 }
 0x2a9   :  { %v559_v28 = vpop.f32.mrb[23].mxu0  ;;  %v565_v41 = vadd.f32 %v888_v27, %v681_v17 }
 0x2aa   :  { %v560_v38 = vadd.f32 %v681_v17, %v559_v28 }
 0x2ac   :  { %611 = vxpose.xlu0.b32.cont [4/16] (narrow) %v545_v29, 8  ;;  %v891_v30 = vpop.f32.mrb[24].mxu0 }
 0x2ad   :  { %v569_v31 = vpop.f32.mrb[25].mxu0  ;;  %v575_v43 = vadd.f32 %v891_v30, %v681_v17 }
 0x2ae   :  { %v570_v42 = vadd.f32 %v681_v17, %v569_v31 }
 0x2b0   :  { %612 = vxpose.xlu0.b32.cont [5/16] (narrow) %v550_v32, 8  ;;  %v894_v33 = vpop.f32.mrb[26].mxu0 }
 0x2b1   :  { %v579_v34 = vpop.f32.mrb[27].mxu0  ;;  %v585_v45 = vadd.f32 %v894_v33, %v681_v17 }
 0x2b2   :  { %v580_v44 = vadd.f32 %v681_v17, %v579_v34 }
 0x2b4   :  { %613 = vxpose.xlu0.b32.cont [6/16] (narrow) %v555_v35, 8  ;;  %v897_v36 = vpop.f32.mrb[28].mxu0 }
 0x2b5   :  { %v589_v37 = vpop.f32.mrb[29].mxu0  ;;  %v595_v47 = vadd.f32 %v897_v36, %v681_v17 }
 0x2b6   :  { %v590_v46 = vadd.f32 %v681_v17, %v589_v37 }
 0x2b8   :  { %614 = vxpose.xlu0.b32.cont [7/16] (narrow) %v560_v38, 8  ;;  %v900_v39 = vpop.f32.mrb[30].mxu0 }
 0x2b9   :  { %v599_v40 = vpop.f32.mrb[31].mxu0  ;;  %v605_v49 = vadd.f32 %v900_v39, %v681_v17 }
 0x2ba   :  { %v600_v48 = vadd.f32 %v681_v17, %v599_v40 }
 0x2bc   :  { %615 = vxpose.xlu0.b32.cont [8/16] (narrow) %v565_v41, 8 }
 0x2c0   :  { %616 = vxpose.xlu0.b32.cont [9/16] (narrow) %v570_v42, 8 }
 0x2c4   :  { %617 = vxpose.xlu0.b32.cont [10/16] (narrow) %v575_v43, 8 }
 0x2c8   :  { %618 = vxpose.xlu0.b32.cont [11/16] (narrow) %v580_v44, 8 }
 0x2cc   :  { %619 = vxpose.xlu0.b32.cont [12/16] (narrow) %v585_v45, 8 }
 0x2d0   :  { %620 = vxpose.xlu0.b32.cont [13/16] (narrow) %v590_v46, 8 }
 0x2d4   :  { %621 = vxpose.xlu0.b32.cont [14/16] (narrow) %v595_v47, 8 }
 0x2d8   :  { %622 = vxpose.xlu0.b32.cont [15/16] (narrow) %v600_v48, 8 }
 0x2dc   :  { %623 = vxpose.xlu0.b32.end [16/16] (narrow) %v605_v49, 8 }
 0x320   :  { %v624_v50 = vpop.trf.xlu0 }
 0x321   :  { %v640_v51 = vrot.slane %v624_v50, 4 }
 0x323   :  { %v641_v52 = vmax.f32 %v624_v50, %v640_v51 }
 0x325   :  { %v642_v53 = vrot.slane %v641_v52, 2 }
 0x327   :  { %v643_v54 = vmax.f32 %v641_v52, %v642_v53 }
 0x329   :  { %v644_v55 = vrot.slane %v643_v54, 1 }
 0x32b   :  { %v645_v56 = vmax.f32 %v643_v54, %v644_v55 }
 0x32d   :  { %v646_v57 = vsub.f32 %v624_v50, %v645_v56 }
 0x32f   :  { %v647_v58 = vmul.f32 1.442695, %v646_v57 }
 0x331   :  { %968 = vpow2.f32 %v647_v58 }
 0x33b   :  { %v969_v59 = vpop.eup %968 }
 0x33c   :  { %v649_v60 = vrot.slane %v969_v59, 4 }
 0x33e   :  { %v650_v61 = vadd.f32 %v969_v59, %v649_v60 }
 0x340   :  { %v651_v62 = vrot.slane %v650_v61, 2 }
 0x342   :  { %v652_v63 = vadd.f32 %v651_v62, %v650_v61 }
 0x344   :  { %v653_v0 = vrot.slane %v652_v63, 1 }
 0x346   :  { %v654_v1 = vadd.f32 %v653_v0, %v652_v63 }
 0x348   :  { %970 = vrcp.f32 %v654_v1 }
 0x352   :  { %v971_v2 = vpop.eup %970 }
 0x353   :  { %v656_v3 = vmul.f32 %v971_v2, %v969_v59 }
 0x355   :  { %657 = vst [vmem:[%s1110_s3] sm:$0xff] %v656_v3 }
 0x356   :  { %662 = vsyncpa [#allocation3], 1 }

</bundles_post_ra>
